<compile_context>
chip_gen: v5e
topology: v5e:2x2
jax: 0.10.0
libtpu: 0.0.40
codegen_flags: <defaults>
</compile_context>

<pallas_src>
import math
from typing import NamedTuple

import jax
import jax.numpy as jnp
from jax.experimental import pallas as pl
from jax.experimental.pallas import tpu as pltpu


def _round_up(n, m):
    return ((n + m - 1) // m) * m


class SpectralTiling(NamedTuple):
    cin: int
    cout: int
    lm: int
    cin_p: int
    cout_p: int
    lmp: int
    cin_tile: int
    cout_tile: int
    lane_tile: int
    vmem_limit_bytes: int


def plan_spectral_tiling(cin, cout, batch, lm, *, lane_tile_max=512,
                         cin_tile_max=64, cout_tile_max=64):
    """Choose block sizes once, at parameter-init time."""
    lane_tile = min(lane_tile_max, _round_up(lm, 128))
    lmp = _round_up(lm, lane_tile)
    cin_tile = min(cin_tile_max, cin)
    cout_tile = min(cout_tile_max, cout)
    cin_p = _round_up(cin, cin_tile)
    cout_p = _round_up(cout, cout_tile)
    # Double-buffered block footprint (f32 worst case) + headroom, capped so
    # the same plan also fits v7x's 64 MiB physical VMEM.
    x_blk = 2 * batch * cin_tile * lane_tile * 4
    w_blk = 2 * cin_tile * cout_tile * lane_tile * 4
    o_blk = 2 * batch * cout_tile * lane_tile * 4
    need = 2 * (x_blk + w_blk + o_blk) + (4 << 20)
    vmem_limit_bytes = int(max(32 << 20, min(48 << 20, need)))
    return SpectralTiling(cin, cout, lm, cin_p, cout_p, lmp,
                          cin_tile, cout_tile, lane_tile, vmem_limit_bytes)


def pack_spectral_weight(weight, cfg, *, dtype=jnp.float32):
    """One-time packing of the SpectralConv weight (Cin, Cout, L, M, 2) into
    the padded (2, Cin_p, Cout_p, LMp) kernel layout.  Do this at parameter
    init time, not per forward call (it is a full HBM pass over the largest
    tensor).  dtype=jnp.bfloat16 halves the dominant HBM weight stream on
    v6e/v7x; the kernel accumulates in f32 either way."""
    cin, cout, L, M, _ = weight.shape
    assert cin == cfg.cin and cout == cfg.cout and L * M == cfg.lm
    w = jnp.moveaxis(weight.astype(jnp.float32), -1, 0).reshape(2, cin, cout, cfg.lm)
    w = jnp.pad(w, ((0, 0), (0, cfg.cin_p - cin), (0, cfg.cout_p - cout),
                    (0, cfg.lmp - cfg.lm)))
    return w.astype(dtype)


def _spectral_contract_kernel(x_ref, w_ref, o_ref):
    # x_ref: (2, B, Ci_t, TL)    packed (real, imag) spectral activations (f32)
    # w_ref: (2, Ci_t, Co_t, TL) packed (real, imag) per-mode weights (f32/bf16)
    # o_ref: (2, B, Co_t, TL)    f32; resident across the Cin (reduction) axis
    ci = pl.program_id(2)
    ci_t = x_ref.shape[2]

    @pl.when(ci == 0)
    def _init():
        o_ref[...] = jnp.zeros_like(o_ref)

    def accum(i, carry):
        acc_r, acc_i = carry
        xr = x_ref[0, :, pl.ds(i, 1), :].astype(jnp.float32)   # (B, 1, TL)
        xi = x_ref[1, :, pl.ds(i, 1), :].astype(jnp.float32)
        wr = w_ref[0, pl.ds(i, 1), :, :].astype(jnp.float32)   # (1, Co_t, TL)
        wi = w_ref[1, pl.ds(i, 1), :, :].astype(jnp.float32)
        acc_r = acc_r + (xr * wr - xi * wi)                    # (B, Co_t, TL)
        acc_i = acc_i + (xr * wi + xi * wr)
        return acc_r, acc_i

    carry = (o_ref[0], o_ref[1])
    if ci_t <= 32:
        # Small channel block: static unroll, indices are compile-time views.
        for i in range(ci_t):
            carry = accum(i, carry)
    else:
        carry = jax.lax.fori_loop(0, ci_t, accum, carry, unroll=8)
    o_ref[0] = carry[0]
    o_ref[1] = carry[1]


def spectral_contract(x_ri, w_ri, cfg):
    """out[b,o,lm] = sum_i x[b,i,lm] * w[i,o,lm]  (complex, packed real/imag).

    x_ri : (2, B, Cin_p, LMp) f32, real/imag stacked on dim 0
    w_ri : (2, Cin_p, Cout_p, LMp) f32 or bf16
    returns (2, B, Cout_p, LMp) f32
    """
    _, B, cin_p, lmp = x_ri.shape
    _, _, cout_p, _ = w_ri.shape
    assert cin_p == cfg.cin_p and cout_p == cfg.cout_p and lmp == cfg.lmp
    grid = (cout_p // cfg.cout_tile, lmp // cfg.lane_tile, cin_p // cfg.cin_tile)
    return pl.pallas_call(
        _spectral_contract_kernel,
        out_shape=jax.ShapeDtypeStruct((2, B, cout_p, lmp), jnp.float32),
        grid_spec=pl.GridSpec(
            grid=grid,
            in_specs=[
                pl.BlockSpec((2, B, cfg.cin_tile, cfg.lane_tile),
                             lambda co, lm, ci: (0, 0, ci, lm)),
                pl.BlockSpec((2, cfg.cin_tile, cfg.cout_tile, cfg.lane_tile),
                             lambda co, lm, ci: (0, ci, co, lm)),
            ],
            out_specs=pl.BlockSpec((2, B, cfg.cout_tile, cfg.lane_tile),
                                   lambda co, lm, ci: (0, 0, co, lm)),
        ),
        compiler_params=pltpu.CompilerParams(
            dimension_semantics=("parallel", "parallel", "arbitrary"),
            vmem_limit_bytes=cfg.vmem_limit_bytes),
    )(x_ri, w_ri)


def spectral_filter_layer(x, w_packed, cfg):
    """SpectralFilterLayer forward with filter_type='linear' (SpectralConv),
    operator_type='diagonal', separable=False, bias=False, RealFFT2 /
    InverseRealFFT2 transforms with lmax=nlat, mmax=nlon//2+1 (no mode
    truncation => scale_residual=False).  Returns (y, residual)."""
    dtype = x.dtype
    residual = x                                   # scale_residual == False
    xf = x.astype(jnp.float32)
    B, C, H, W = xf.shape
    assert C == cfg.cin

    # forward transform (RealFFT2, norm="ortho", no truncation)
    xhat = jnp.fft.rfft2(xf, axes=(-2, -1), norm="ortho")      # (B,C,L,M) c64
    L, M = xhat.shape[-2], xhat.shape[-1]
    assert L * M == cfg.lm

    # pack real/imag and pad channels/modes to the kernel layout in one pad.
    x_ri = jnp.stack((jnp.real(xhat), jnp.imag(xhat))).reshape(2, B, C, cfg.lm)
    x_ri = jnp.pad(x_ri, ((0, 0), (0, 0), (0, cfg.cin_p - C),
                          (0, cfg.lmp - cfg.lm)))
    # TODO(synk): the x pad and the output slice below are extra
    # activation-sized HBM passes; fold into ragged last blocks if they show
    # up in the profile.

    out_ri = spectral_contract(x_ri, w_packed, cfg)            # (2,B,Cout_p,LMp)
    out_ri = out_ri[:, :, :cfg.cout, :cfg.lm].reshape(2, B, cfg.cout, L, M)
    yhat = jax.lax.complex(out_ri[0], out_ri[1])

    # inverse transform (InverseRealFFT2, norm="ortho")
    y = jnp.fft.irfft2(yhat, s=(H, W), axes=(-2, -1), norm="ortho")
    return y.astype(dtype), residual


if __name__ == "__main__":
    # Small shapes consistent with the module: batch=2, embed_dim=4, 16x16 grid.
    B, C, H, W = 2, 4, 16, 16
    L, M = H, W // 2 + 1        # lmax=nlat, mmax=nlon//2+1 (no truncation)
    gain = 1.0

    key = jax.random.PRNGKey(0)
    kx, kw = jax.random.split(key)
    x = jax.random.normal(kx, (B, C, H, W), dtype=jnp.float32)

    # deterministic weight init, matching SpectralConv.__init__:
    # scale * randn(in_channels, out_channels, modes_lat, modes_lon, 2)
    scale = math.sqrt(gain / C)
    weight = scale * jax.random.normal(kw, (C, C, L, M, 2), dtype=jnp.float32)

    # one-time parameter packing (init-time, outside the forward pass)
    cfg = plan_spectral_tiling(C, C, B, L * M)
    w_packed = pack_spectral_weight(weight, cfg, dtype=jnp.float32)

    fwd = jax.jit(lambda xx, ww: spectral_filter_layer(xx, ww, cfg))
    y, residual = fwd(x, w_packed)
    jax.block_until_ready((y, residual))

    # pure-JAX reference for the full forward (contraction via einsum)
    xhat = jnp.fft.rfft2(x.astype(jnp.float32), axes=(-2, -1), norm="ortho")
    w_c = weight[..., 0] + 1j * weight[..., 1]
    yhat_ref = jnp.einsum("bilm,iolm->bolm", xhat, w_c)
    y_ref = jnp.fft.irfft2(yhat_ref, s=(H, W), axes=(-2, -1),
                           norm="ortho").astype(x.dtype)

    assert y.shape == (B, C, H, W) and residual.shape == (B, C, H, W)
    assert jnp.allclose(residual, x)
    assert jnp.allclose(y, y_ref, atol=1e-5, rtol=1e-5), float(
        jnp.max(jnp.abs(y - y_ref)))

    # bf16 weight-streaming path (v6e/v7x bandwidth lever; f32 accumulation).
    w_packed_bf16 = pack_spectral_weight(weight, cfg, dtype=jnp.bfloat16)
    y_bf16, _ = fwd(x, w_packed_bf16)
    jax.block_until_ready(y_bf16)
    w_bf = weight.astype(jnp.bfloat16).astype(jnp.float32)
    yhat_ref_bf = jnp.einsum("bilm,iolm->bolm", xhat,
                             w_bf[..., 0] + 1j * w_bf[..., 1])
    y_ref_bf = jnp.fft.irfft2(yhat_ref_bf, s=(H, W), axes=(-2, -1),
                              norm="ortho").astype(x.dtype)
    assert jnp.allclose(y_bf16, y_ref_bf, atol=1e-4, rtol=1e-4), float(
        jnp.max(jnp.abs(y_bf16 - y_ref_bf)))

    print("KERNEL_OK")
</pallas_src>

<mosaic_0001>
module attributes {stable_mosaic.version = 11 : i64} {
  func.func @_spectral_contract_kernel(%arg0: i32, %arg1: i32, %arg2: i32, %arg3: memref<2x2x4x256xf32, #tpu.memory_space<vmem>>, %arg4: memref<2x4x4x256xf32, #tpu.memory_space<vmem>>, %arg5: memref<2x2x4x256xf32, #tpu.memory_space<vmem>>) attributes {dimension_semantics = [#tpu.dimension_semantics<parallel>, #tpu.dimension_semantics<parallel>, #tpu.dimension_semantics<arbitrary>], iteration_bounds = array<i64: 1, 1, 1>, scalar_prefetch = 0 : i64, scratch_operands = 0 : i64, tpu.core_type = #tpu.core_type<tc>, window_params = [{transform_indices = @transform_0, window_bounds = array<i64: 2, 2, 4, 256>}, {transform_indices = @transform_1, window_bounds = array<i64: 2, 4, 4, 256>}, {transform_indices = @transform_2, window_bounds = array<i64: 2, 2, 4, 256>}]} {
    %c0_i32 = arith.constant 0 : i32
    %0 = arith.cmpi eq, %arg2, %c0_i32 : i32
    %1 = arith.extui %0 : i1 to i32
    %c0_i32_0 = arith.constant 0 : i32
    %2 = arith.cmpi ne, %1, %c0_i32_0 : i32
    scf.if %2 {
      %cst = arith.constant 0.000000e+00 : f32
      %109 = vector.broadcast %cst : f32 to vector<2x2x4x256xf32>
      %c0_77 = arith.constant 0 : index
      %c0_78 = arith.constant 0 : index
      %c0_79 = arith.constant 0 : index
      %c0_80 = arith.constant 0 : index
      %110 = vector.load %arg5[%c0_77, %c0_78, %c0_79, %c0_80] : memref<2x2x4x256xf32, #tpu.memory_space<vmem>>, vector<2x2x4x256xf32>
      tpu.vector_store %arg5[%c0_77, %c0_78, %c0_79, %c0_80], %109 {strides = array<i32>} : memref<2x2x4x256xf32, #tpu.memory_space<vmem>>, vector<2x2x4x256xf32>,
    } else {
    }
    %c0 = arith.constant 0 : index
    %c0_1 = arith.constant 0 : index
    %c0_2 = arith.constant 0 : index
    %c0_3 = arith.constant 0 : index
    %3 = vector.load %arg5[%c0, %c0_1, %c0_2, %c0_3] : memref<2x2x4x256xf32, #tpu.memory_space<vmem>>, vector<1x2x4x256xf32>
    %4 = vector.shape_cast %3 : vector<1x2x4x256xf32> to vector<2x4x256xf32>
    %c1 = arith.constant 1 : index
    %c0_4 = arith.constant 0 : index
    %c0_5 = arith.constant 0 : index
    %c0_6 = arith.constant 0 : index
    %5 = vector.load %arg5[%c1, %c0_4, %c0_5, %c0_6] : memref<2x2x4x256xf32, #tpu.memory_space<vmem>>, vector<1x2x4x256xf32>
    %6 = vector.shape_cast %5 : vector<1x2x4x256xf32> to vector<2x4x256xf32>
    %c0_7 = arith.constant 0 : index
    %c0_8 = arith.constant 0 : index
    %c0_9 = arith.constant 0 : index
    %c0_10 = arith.constant 0 : index
    %7 = vector.load %arg3[%c0_7, %c0_8, %c0_9, %c0_10] : memref<2x2x4x256xf32, #tpu.memory_space<vmem>>, vector<1x2x1x256xf32>
    %8 = vector.shape_cast %7 : vector<1x2x1x256xf32> to vector<2x1x256xf32>
    %c1_11 = arith.constant 1 : index
    %c0_12 = arith.constant 0 : index
    %c0_13 = arith.constant 0 : index
    %c0_14 = arith.constant 0 : index
    %9 = vector.load %arg3[%c1_11, %c0_12, %c0_13, %c0_14] : memref<2x2x4x256xf32, #tpu.memory_space<vmem>>, vector<1x2x1x256xf32>
    %10 = vector.shape_cast %9 : vector<1x2x1x256xf32> to vector<2x1x256xf32>
    %c0_15 = arith.constant 0 : index
    %c0_16 = arith.constant 0 : index
    %c0_17 = arith.constant 0 : index
    %c0_18 = arith.constant 0 : index
    %11 = vector.load %arg4[%c0_15, %c0_16, %c0_17, %c0_18] : memref<2x4x4x256xf32, #tpu.memory_space<vmem>>, vector<1x1x4x256xf32>
    %12 = vector.shape_cast %11 : vector<1x1x4x256xf32> to vector<1x4x256xf32>
    %c1_19 = arith.constant 1 : index
    %c0_20 = arith.constant 0 : index
    %c0_21 = arith.constant 0 : index
    %c0_22 = arith.constant 0 : index
    %13 = vector.load %arg4[%c1_19, %c0_20, %c0_21, %c0_22] : memref<2x4x4x256xf32, #tpu.memory_space<vmem>>, vector<1x1x4x256xf32>
    %14 = vector.shape_cast %13 : vector<1x1x4x256xf32> to vector<1x4x256xf32>
    %15 = vector.broadcast %8 : vector<2x1x256xf32> to vector<2x4x256xf32>
    %16 = vector.broadcast %12 : vector<1x4x256xf32> to vector<2x4x256xf32>
    %17 = arith.mulf %15, %16 : vector<2x4x256xf32>
    %18 = vector.broadcast %10 : vector<2x1x256xf32> to vector<2x4x256xf32>
    %19 = vector.broadcast %14 : vector<1x4x256xf32> to vector<2x4x256xf32>
    %20 = arith.mulf %18, %19 : vector<2x4x256xf32>
    %21 = arith.subf %17, %20 : vector<2x4x256xf32>
    %22 = arith.addf %4, %21 : vector<2x4x256xf32>
    %23 = vector.broadcast %8 : vector<2x1x256xf32> to vector<2x4x256xf32>
    %24 = vector.broadcast %14 : vector<1x4x256xf32> to vector<2x4x256xf32>
    %25 = arith.mulf %23, %24 : vector<2x4x256xf32>
    %26 = vector.broadcast %10 : vector<2x1x256xf32> to vector<2x4x256xf32>
    %27 = vector.broadcast %12 : vector<1x4x256xf32> to vector<2x4x256xf32>
    %28 = arith.mulf %26, %27 : vector<2x4x256xf32>
    %29 = arith.addf %25, %28 : vector<2x4x256xf32>
    %30 = arith.addf %6, %29 : vector<2x4x256xf32>
    %c0_23 = arith.constant 0 : index
    %c0_24 = arith.constant 0 : index
    %c1_25 = arith.constant 1 : index
    %c0_26 = arith.constant 0 : index
    %31 = vector.load %arg3[%c0_23, %c0_24, %c1_25, %c0_26] : memref<2x2x4x256xf32, #tpu.memory_space<vmem>>, vector<1x2x1x256xf32>
    %32 = vector.shape_cast %31 : vector<1x2x1x256xf32> to vector<2x1x256xf32>
    %c1_27 = arith.constant 1 : index
    %c0_28 = arith.constant 0 : index
    %c1_29 = arith.constant 1 : index
    %c0_30 = arith.constant 0 : index
    %33 = vector.load %arg3[%c1_27, %c0_28, %c1_29, %c0_30] : memref<2x2x4x256xf32, #tpu.memory_space<vmem>>, vector<1x2x1x256xf32>
    %34 = vector.shape_cast %33 : vector<1x2x1x256xf32> to vector<2x1x256xf32>
    %c0_31 = arith.constant 0 : index
    %c1_32 = arith.constant 1 : index
    %c0_33 = arith.constant 0 : index
    %c0_34 = arith.constant 0 : index
    %35 = vector.load %arg4[%c0_31, %c1_32, %c0_33, %c0_34] : memref<2x4x4x256xf32, #tpu.memory_space<vmem>>, vector<1x1x4x256xf32>
    %36 = vector.shape_cast %35 : vector<1x1x4x256xf32> to vector<1x4x256xf32>
    %c1_35 = arith.constant 1 : index
    %c1_36 = arith.constant 1 : index
    %c0_37 = arith.constant 0 : index
    %c0_38 = arith.constant 0 : index
    %37 = vector.load %arg4[%c1_35, %c1_36, %c0_37, %c0_38] : memref<2x4x4x256xf32, #tpu.memory_space<vmem>>, vector<1x1x4x256xf32>
    %38 = vector.shape_cast %37 : vector<1x1x4x256xf32> to vector<1x4x256xf32>
    %39 = vector.broadcast %32 : vector<2x1x256xf32> to vector<2x4x256xf32>
    %40 = vector.broadcast %36 : vector<1x4x256xf32> to vector<2x4x256xf32>
    %41 = arith.mulf %39, %40 : vector<2x4x256xf32>
    %42 = vector.broadcast %34 : vector<2x1x256xf32> to vector<2x4x256xf32>
    %43 = vector.broadcast %38 : vector<1x4x256xf32> to vector<2x4x256xf32>
    %44 = arith.mulf %42, %43 : vector<2x4x256xf32>
    %45 = arith.subf %41, %44 : vector<2x4x256xf32>
    %46 = arith.addf %22, %45 : vector<2x4x256xf32>
    %47 = vector.broadcast %32 : vector<2x1x256xf32> to vector<2x4x256xf32>
    %48 = vector.broadcast %38 : vector<1x4x256xf32> to vector<2x4x256xf32>
    %49 = arith.mulf %47, %48 : vector<2x4x256xf32>
    %50 = vector.broadcast %34 : vector<2x1x256xf32> to vector<2x4x256xf32>
    %51 = vector.broadcast %36 : vector<1x4x256xf32> to vector<2x4x256xf32>
    %52 = arith.mulf %50, %51 : vector<2x4x256xf32>
    %53 = arith.addf %49, %52 : vector<2x4x256xf32>
    %54 = arith.addf %30, %53 : vector<2x4x256xf32>
    %c0_39 = arith.constant 0 : index
    %c0_40 = arith.constant 0 : index
    %c2 = arith.constant 2 : index
    %c0_41 = arith.constant 0 : index
    %55 = vector.load %arg3[%c0_39, %c0_40, %c2, %c0_41] : memref<2x2x4x256xf32, #tpu.memory_space<vmem>>, vector<1x2x1x256xf32>
    %56 = vector.shape_cast %55 : vector<1x2x1x256xf32> to vector<2x1x256xf32>
    %c1_42 = arith.constant 1 : index
    %c0_43 = arith.constant 0 : index
    %c2_44 = arith.constant 2 : index
    %c0_45 = arith.constant 0 : index
    %57 = vector.load %arg3[%c1_42, %c0_43, %c2_44, %c0_45] : memref<2x2x4x256xf32, #tpu.memory_space<vmem>>, vector<1x2x1x256xf32>
    %58 = vector.shape_cast %57 : vector<1x2x1x256xf32> to vector<2x1x256xf32>
    %c0_46 = arith.constant 0 : index
    %c2_47 = arith.constant 2 : index
    %c0_48 = arith.constant 0 : index
    %c0_49 = arith.constant 0 : index
    %59 = vector.load %arg4[%c0_46, %c2_47, %c0_48, %c0_49] : memref<2x4x4x256xf32, #tpu.memory_space<vmem>>, vector<1x1x4x256xf32>
    %60 = vector.shape_cast %59 : vector<1x1x4x256xf32> to vector<1x4x256xf32>
    %c1_50 = arith.constant 1 : index
    %c2_51 = arith.constant 2 : index
    %c0_52 = arith.constant 0 : index
    %c0_53 = arith.constant 0 : index
    %61 = vector.load %arg4[%c1_50, %c2_51, %c0_52, %c0_53] : memref<2x4x4x256xf32, #tpu.memory_space<vmem>>, vector<1x1x4x256xf32>
    %62 = vector.shape_cast %61 : vector<1x1x4x256xf32> to vector<1x4x256xf32>
    %63 = vector.broadcast %56 : vector<2x1x256xf32> to vector<2x4x256xf32>
    %64 = vector.broadcast %60 : vector<1x4x256xf32> to vector<2x4x256xf32>
    %65 = arith.mulf %63, %64 : vector<2x4x256xf32>
    %66 = vector.broadcast %58 : vector<2x1x256xf32> to vector<2x4x256xf32>
    %67 = vector.broadcast %62 : vector<1x4x256xf32> to vector<2x4x256xf32>
    %68 = arith.mulf %66, %67 : vector<2x4x256xf32>
    %69 = arith.subf %65, %68 : vector<2x4x256xf32>
    %70 = arith.addf %46, %69 : vector<2x4x256xf32>
    %71 = vector.broadcast %56 : vector<2x1x256xf32> to vector<2x4x256xf32>
    %72 = vector.broadcast %62 : vector<1x4x256xf32> to vector<2x4x256xf32>
    %73 = arith.mulf %71, %72 : vector<2x4x256xf32>
    %74 = vector.broadcast %58 : vector<2x1x256xf32> to vector<2x4x256xf32>
    %75 = vector.broadcast %60 : vector<1x4x256xf32> to vector<2x4x256xf32>
    %76 = arith.mulf %74, %75 : vector<2x4x256xf32>
    %77 = arith.addf %73, %76 : vector<2x4x256xf32>
    %78 = arith.addf %54, %77 : vector<2x4x256xf32>
    %c0_54 = arith.constant 0 : index
    %c0_55 = arith.constant 0 : index
    %c3 = arith.constant 3 : index
    %c0_56 = arith.constant 0 : index
    %79 = vector.load %arg3[%c0_54, %c0_55, %c3, %c0_56] : memref<2x2x4x256xf32, #tpu.memory_space<vmem>>, vector<1x2x1x256xf32>
    %80 = vector.shape_cast %79 : vector<1x2x1x256xf32> to vector<2x1x256xf32>
    %c1_57 = arith.constant 1 : index
    %c0_58 = arith.constant 0 : index
    %c3_59 = arith.constant 3 : index
    %c0_60 = arith.constant 0 : index
    %81 = vector.load %arg3[%c1_57, %c0_58, %c3_59, %c0_60] : memref<2x2x4x256xf32, #tpu.memory_space<vmem>>, vector<1x2x1x256xf32>
    %82 = vector.shape_cast %81 : vector<1x2x1x256xf32> to vector<2x1x256xf32>
    %c0_61 = arith.constant 0 : index
    %c3_62 = arith.constant 3 : index
    %c0_63 = arith.constant 0 : index
    %c0_64 = arith.constant 0 : index
    %83 = vector.load %arg4[%c0_61, %c3_62, %c0_63, %c0_64] : memref<2x4x4x256xf32, #tpu.memory_space<vmem>>, vector<1x1x4x256xf32>
    %84 = vector.shape_cast %83 : vector<1x1x4x256xf32> to vector<1x4x256xf32>
    %c1_65 = arith.constant 1 : index
    %c3_66 = arith.constant 3 : index
    %c0_67 = arith.constant 0 : index
    %c0_68 = arith.constant 0 : index
    %85 = vector.load %arg4[%c1_65, %c3_66, %c0_67, %c0_68] : memref<2x4x4x256xf32, #tpu.memory_space<vmem>>, vector<1x1x4x256xf32>
    %86 = vector.shape_cast %85 : vector<1x1x4x256xf32> to vector<1x4x256xf32>
    %87 = vector.broadcast %80 : vector<2x1x256xf32> to vector<2x4x256xf32>
    %88 = vector.broadcast %84 : vector<1x4x256xf32> to vector<2x4x256xf32>
    %89 = arith.mulf %87, %88 : vector<2x4x256xf32>
    %90 = vector.broadcast %82 : vector<2x1x256xf32> to vector<2x4x256xf32>
    %91 = vector.broadcast %86 : vector<1x4x256xf32> to vector<2x4x256xf32>
    %92 = arith.mulf %90, %91 : vector<2x4x256xf32>
    %93 = arith.subf %89, %92 : vector<2x4x256xf32>
    %94 = arith.addf %70, %93 : vector<2x4x256xf32>
    %95 = vector.broadcast %80 : vector<2x1x256xf32> to vector<2x4x256xf32>
    %96 = vector.broadcast %86 : vector<1x4x256xf32> to vector<2x4x256xf32>
    %97 = arith.mulf %95, %96 : vector<2x4x256xf32>
    %98 = vector.broadcast %82 : vector<2x1x256xf32> to vector<2x4x256xf32>
    %99 = vector.broadcast %84 : vector<1x4x256xf32> to vector<2x4x256xf32>
    %100 = arith.mulf %98, %99 : vector<2x4x256xf32>
    %101 = arith.addf %97, %100 : vector<2x4x256xf32>
    %102 = arith.addf %78, %101 : vector<2x4x256xf32>
    %c0_69 = arith.constant 0 : index
    %c0_70 = arith.constant 0 : index
    %c0_71 = arith.constant 0 : index
    %c0_72 = arith.constant 0 : index
    %103 = vector.load %arg5[%c0_69, %c0_70, %c0_71, %c0_72] : memref<2x2x4x256xf32, #tpu.memory_space<vmem>>, vector<1x2x4x256xf32>
    %104 = vector.shape_cast %103 : vector<1x2x4x256xf32> to vector<2x4x256xf32>
    %105 = vector.shape_cast %94 : vector<2x4x256xf32> to vector<1x2x4x256xf32>
    tpu.vector_store %arg5[%c0_69, %c0_70, %c0_71, %c0_72], %105 {strides = array<i32>} : memref<2x2x4x256xf32, #tpu.memory_space<vmem>>, vector<1x2x4x256xf32>,
    %c1_73 = arith.constant 1 : index
    %c0_74 = arith.constant 0 : index
    %c0_75 = arith.constant 0 : index
    %c0_76 = arith.constant 0 : index
    %106 = vector.load %arg5[%c1_73, %c0_74, %c0_75, %c0_76] : memref<2x2x4x256xf32, #tpu.memory_space<vmem>>, vector<1x2x4x256xf32>
    %107 = vector.shape_cast %106 : vector<1x2x4x256xf32> to vector<2x4x256xf32>
    %108 = vector.shape_cast %102 : vector<2x4x256xf32> to vector<1x2x4x256xf32>
    tpu.vector_store %arg5[%c1_73, %c0_74, %c0_75, %c0_76], %108 {strides = array<i32>} : memref<2x2x4x256xf32, #tpu.memory_space<vmem>>, vector<1x2x4x256xf32>,
    return
  }
  func.func @transform_0(%arg0: i32, %arg1: i32, %arg2: i32) -> (i32, i32, i32, i32) {
    %c0_i32 = arith.constant 0 : i32
    %c0_i32_0 = arith.constant 0 : i32
    %c0_i32_1 = arith.constant 0 : i32
    return %c0_i32, %c0_i32_0, %arg2, %arg1 : i32, i32, i32, i32
  }
  func.func @transform_1(%arg0: i32, %arg1: i32, %arg2: i32) -> (i32, i32, i32, i32) {
    %c0_i32 = arith.constant 0 : i32
    %c0_i32_0 = arith.constant 0 : i32
    return %c0_i32, %arg2, %arg0, %arg1 : i32, i32, i32, i32
  }
  func.func @transform_2(%arg0: i32, %arg1: i32, %arg2: i32) -> (i32, i32, i32, i32) {
    %c0_i32 = arith.constant 0 : i32
    %c0_i32_0 = arith.constant 0 : i32
    %c0_i32_1 = arith.constant 0 : i32
    return %c0_i32, %c0_i32_0, %arg0, %arg1 : i32, i32, i32, i32
  }
}

</mosaic_0001>

<bundles_post_ra>
// kernel: squeeze.2
= control target key start
LH: loop header
LB: loop body
LE: loop exit
PB: predicated region body
PF: predicated region fallthrough
CT: control target
= control target key end

     0   :  { %vm33_vm0 = vcmask 1047556   ;;  %s372_s14 = smov 121   ;;  %vm265_vm1 = vcmask 1031168   ;;  %s373_s15 = smov 101   ;;  %vm19_vm2 = vcmask 72704   ;;  %vm269_vm3 = vcmask 15360   ;;  %s688_s0 = inlined_call_operand.vmem [shape: f32[1,2,4,144], index: 0, kind: input, shape index: {}]   ;;  %s689_s1 = inlined_call_operand.vmem [shape: f32[2,4,16,9], index: 1, kind: output, shape index: {}]  }
   0x1   :  { %v288_v0 = vld [vmem:[%s688_s0 + $0x8] sm:$0xf]  ;;  %v16_v1 = vld [vmem:[%s688_s0] sm:$0xf]  ;;  %v287_v2 = vld [vmem:[%s688_s0 + $0xc] sm:$0xf] }
   0x2   :  { %11 = vst [vmem:[#allocation0 + $0x10] sm:$0xf] %v288_v0  ;;  %v289_v3 = vld [vmem:[%s688_s0 + $0x4] sm:$0xf]  ;;  %s371_s0 = smov 110   ;;  %s374_s16 = smov 2  }
   0x3   :  { %17 = vst [vmem:[#allocation0] sm:$0xf] %v16_v1  ;;  %s375_s17 = smov 119   ;;  %s376_s18 = smov 92   ;;  %vm278_vm4 = vcmask 72720  }
   0x4   :  { %7 = vst [vmem:[#allocation0 + $0x18] sm:$0xf] %v287_v2  ;;  %s377_s19 = smov 74   ;;  %s378_s20 = smov 83  }
   0x5   :  { %15 = vst [vmem:[#allocation0 + $0x8] sm:$0xf] %v289_v3  ;;  %s379_s21 = smov 65   ;;  %s380_s22 = smov 47  }
   0x6   :  { %s381_s23 = smov 56   ;;  %s382_s24 = smov 38  }
   0x7   :  { %s383_s25 = smov 20   ;;  %s384_s26 = smov 29  }
   0x8   :  { %s385_s27 = smov 11  }
   0x9   :  { %v64_v4 = vld [vmem:[#allocation0 + $0xc] sm:$0xf0]  }
   0xa   :  { %v62_v5 = vld [vmem:[#allocation0] sm:$0xf]   ;;  %v256_v6 = vld [vmem:[#allocation0 + $0xc] sm:$0xf0]  }
   0xb   :  { %v66_v7 = vsel %vm33_vm0, %v64_v4, %v62_v5  ;;  %v32_v8 = vld [vmem:[#allocation0 + $0x14] sm:$0xf0]   ;;  %v254_v9 = vld [vmem:[#allocation0] sm:$0xf]   ;;  %v80_v17 = vld [vmem:[#allocation0 + $0xc] sm:$0xf0]  }
   0xc   :  { %v262_v10 = vld [vmem:[#allocation0 + $0x14] sm:$0xf0]   ;;  %67 = vrot.lane.b32.xlu1 %v66_v7, %s371_s0  ;;  %v30_v11 = vld [vmem:[#allocation0 + $0x8] sm:$0xf]   ;;  %v78_v14 = vld [vmem:[#allocation0] sm:$0xf]   ;;  %v258_v15 = vsel %vm33_vm0, %v256_v6, %v254_v9 }
   0xd   :  { %v260_v12 = vld [vmem:[#allocation0 + $0x8] sm:$0xf]   ;;  %v34_v13 = vsel %vm33_vm0, %v32_v8, %v30_v11  ;;  %v82_v18 = vsel %vm33_vm0, %v80_v17, %v78_v14  ;;  %v46_v19 = vld [vmem:[#allocation0] sm:$0xf]   ;;  %v48_v20 = vld [vmem:[#allocation0 + $0xc] sm:$0xf0]  }
   0xe   :  { %35 = vrot.lane.b32.xlu0 %v34_v13, %s372_s14  ;;  %v264_v16 = vsel %vm33_vm0, %v262_v10, %v260_v12  ;;  %83 = vrot.lane.b32.xlu2 %v82_v18, %s373_s15  ;;  %v94_v22 = vld [vmem:[#allocation0] sm:$0xf]   ;;  %v96_v23 = vld [vmem:[#allocation0 + $0xc] sm:$0xf0]   ;;  %v50_v24 = vsel %vm33_vm0, %v48_v20, %v46_v19 }
   0xf   :  { %v266_v21 = vsel %vm265_vm1, %v264_v16, %v258_v15  ;;  %v98_v25 = vsel %vm33_vm0, %v96_v23, %v94_v22  ;;  %v126_v26 = vld [vmem:[#allocation0] sm:$0xf]   ;;  %v128_v27 = vld [vmem:[#allocation0 + $0xc] sm:$0xf0]  }
  0x10   :  { %v110_v28 = vld [vmem:[#allocation0] sm:$0xf]   ;;  %v112_v29 = vld [vmem:[#allocation0 + $0xc] sm:$0xf0]   ;;  %v130_v30 = vsel %vm33_vm0, %v128_v27, %v126_v26 }
  0x11   :  { %v142_v31 = vld [vmem:[#allocation0] sm:$0xf]   ;;  %v144_v32 = vld [vmem:[#allocation0 + $0xc] sm:$0xf0]   ;;  %v114_v33 = vsel %vm33_vm0, %v112_v29, %v110_v28 }
  0x12   :  { %v146_v34 = vsel %vm33_vm0, %v144_v32, %v142_v31  ;;  %v174_v35 = vld [vmem:[#allocation0] sm:$0xf]   ;;  %v176_v36 = vld [vmem:[#allocation0 + $0xc] sm:$0xf0]  }
  0x13   :  { %v158_v37 = vld [vmem:[#allocation0] sm:$0xf]   ;;  %v160_v38 = vld [vmem:[#allocation0 + $0xc] sm:$0xf0]   ;;  %v178_v39 = vsel %vm33_vm0, %v176_v36, %v174_v35 }
  0x14   :  { %267 = vrot.lane.b32.xlu1 %v266_v21, %s374_s16  ;;  %v190_v40 = vld [vmem:[#allocation0] sm:$0xf]   ;;  %v192_v41 = vld [vmem:[#allocation0 + $0xc] sm:$0xf0]   ;;  %v162_v42 = vsel %vm33_vm0, %v160_v38, %v158_v37 }
  0x15   :  { %v194_v43 = vsel %vm33_vm0, %v192_v41, %v190_v40  ;;  %v222_v44 = vld [vmem:[#allocation0] sm:$0xf]   ;;  %v224_v45 = vld [vmem:[#allocation0 + $0xc] sm:$0xf0]  }
  0x16   :  { %51 = vrot.lane.b32.xlu0 %v50_v24, %s375_s17  ;;  %99 = vrot.lane.b32.xlu2 %v98_v25, %s376_s18  ;;  %v206_v46 = vld [vmem:[#allocation0] sm:$0xf]   ;;  %v208_v47 = vld [vmem:[#allocation0 + $0xc] sm:$0xf0]   ;;  %v226_v48 = vsel %vm33_vm0, %v224_v45, %v222_v44 }
  0x17   :  { %v238_v49 = vld [vmem:[#allocation0] sm:$0xf]   ;;  %v240_v50 = vld [vmem:[#allocation0 + $0xc] sm:$0xf0]   ;;  %v210_v51 = vsel %vm33_vm0, %v208_v47, %v206_v46 }
  0x18   :  { %v242_v52 = vsel %vm33_vm0, %v240_v50, %v238_v49  ;;  %v18_v4 = vld [vmem:[#allocation0] sm:$0xf]   ;;  %v23_v5 = vld [vmem:[#allocation0 + $0x10] sm:$0xf]  }
  0x19   :  { %20 = vst.msk [vmem:[%s689_s1] ss:$16 sm:$0x3] %vm19_vm2, %v18_v4  }
  0x1a   :  { %21 = vst.msk [vmem:[%s689_s1] ss:$16 sm:$0xc] %vm19_vm2, %v18_v4  }
  0x1b   :  { %290 = vst.msk [vmem:[%s689_s1 + $0x40] ss:$16 sm:$0x3] %vm19_vm2, %v23_v5  }
  0x1c   :  { %131 = vrot.lane.b32.xlu1 %v130_v30, %s377_s19  ;;  %291 = vst.msk [vmem:[%s689_s1 + $0x40] ss:$16 sm:$0xc] %vm19_vm2, %v23_v5  }
  0x1e   :  { %115 = vrot.lane.b32.xlu0 %v114_v33, %s378_s20  ;;  %147 = vrot.lane.b32.xlu2 %v146_v34, %s379_s21 }
  0x24   :  { %179 = vrot.lane.b32.xlu1 %v178_v39, %s380_s22 }
  0x26   :  { %163 = vrot.lane.b32.xlu0 %v162_v42, %s381_s23  ;;  %195 = vrot.lane.b32.xlu2 %v194_v43, %s382_s24 }
  0x2c   :  { %227 = vrot.lane.b32.xlu1 %v226_v48, %s383_s25 }
  0x2e   :  { %211 = vrot.lane.b32.xlu0 %v210_v51, %s384_s26  ;;  %243 = vrot.lane.b32.xlu2 %v242_v52, %s385_s27 }
  0x68   :  { %v84_v53 = vpop.permute.xlu2 %83  }
  0x69   :  { %304 = vst.msk [vmem:[%s689_s1 + $0x3] ss:$16 sm:$0x3] %vm19_vm2, %v84_v53  }
  0x6a   :  { %305 = vst.msk [vmem:[%s689_s1 + $0x3] ss:$16 sm:$0xc] %vm19_vm2, %v84_v53  }
  0x6b   :  { %306 = vst.msk [vmem:[%s689_s1 + $0x3] ss:$16 sm:$0x30] %vm19_vm2, %v84_v53  }
  0x6c   :  { %307 = vst.msk [vmem:[%s689_s1 + $0x3] ss:$16 sm:$0xc0] %vm19_vm2, %v84_v53  }
  0x70   :  { %v100_v54 = vpop.permute.xlu2 %99  }
  0x71   :  { %308 = vst.msk [vmem:[%s689_s1 + $0x4] ss:$16 sm:$0x3] %vm19_vm2, %v100_v54  }
  0x72   :  { %309 = vst.msk [vmem:[%s689_s1 + $0x4] ss:$16 sm:$0xc] %vm19_vm2, %v100_v54  }
  0x73   :  { %310 = vst.msk [vmem:[%s689_s1 + $0x4] ss:$16 sm:$0x30] %vm19_vm2, %v100_v54  }
  0x74   :  { %311 = vst.msk [vmem:[%s689_s1 + $0x4] ss:$16 sm:$0xc0] %vm19_vm2, %v100_v54  }
  0x78   :  { %v148_v55 = vpop.permute.xlu2 %147  }
  0x79   :  { %320 = vst.msk [vmem:[%s689_s1 + $0x7] ss:$16 sm:$0x3] %vm19_vm2, %v148_v55  }
  0x7a   :  { %321 = vst.msk [vmem:[%s689_s1 + $0x7] ss:$16 sm:$0xc] %vm19_vm2, %v148_v55  }
  0x7b   :  { %322 = vst.msk [vmem:[%s689_s1 + $0x7] ss:$16 sm:$0x30] %vm19_vm2, %v148_v55  }
  0x7c   :  { %323 = vst.msk [vmem:[%s689_s1 + $0x7] ss:$16 sm:$0xc0] %vm19_vm2, %v148_v55  }
  0x7e   :  { %v68_v56 = vpop.permute.xlu1 %67  }
  0x7f   :  { %300 = vst.msk [vmem:[%s689_s1 + $0x2] ss:$16 sm:$0x3] %vm19_vm2, %v68_v56  }
  0x80   :  { %301 = vst.msk [vmem:[%s689_s1 + $0x2] ss:$16 sm:$0xc] %vm19_vm2, %v68_v56   ;;  %v36_v57 = vpop.permute.xlu0 %35   ;;  %v196_v58 = vpop.permute.xlu2 %195  }
  0x81   :  { %302 = vst.msk [vmem:[%s689_s1 + $0x2] ss:$16 sm:$0x30] %vm19_vm2, %v68_v56  }
  0x82   :  { %303 = vst.msk [vmem:[%s689_s1 + $0x2] ss:$16 sm:$0xc0] %vm19_vm2, %v68_v56  }
  0x83   :  { %292 = vst.msk [vmem:[%s689_s1 + $0xf] ss:$16 sm:$0x3] %vm19_vm2, %v36_v57  }
  0x84   :  { %293 = vst.msk [vmem:[%s689_s1 + $0xf] ss:$16 sm:$0xc] %vm19_vm2, %v36_v57  }
  0x85   :  { %294 = vst.msk [vmem:[%s689_s1 + $0xf] ss:$16 sm:$0x30] %vm19_vm2, %v36_v57  }
  0x86   :  { %295 = vst.msk [vmem:[%s689_s1 + $0xf] ss:$16 sm:$0xc0] %vm19_vm2, %v36_v57   ;;  %v268_v59 = vpop.permute.xlu1 %267  }
  0x87   :  { %348 = vst.msk [vmem:[%s689_s1 + $0xe] ss:$16 sm:$0x3] %vm269_vm3, %v268_v59  }
  0x88   :  { %349 = vst.msk [vmem:[%s689_s1 + $0xe] ss:$16 sm:$0xc] %vm269_vm3, %v268_v59   ;;  %v52_v60 = vpop.permute.xlu0 %51   ;;  %v244_v61 = vpop.permute.xlu2 %243  }
  0x89   :  { %350 = vst.msk [vmem:[%s689_s1 + $0xe] ss:$16 sm:$0x30] %vm269_vm3, %v268_v59  }
  0x8a   :  { %351 = vst.msk [vmem:[%s689_s1 + $0xe] ss:$16 sm:$0xc0] %vm269_vm3, %v268_v59  }
  0x8b   :  { %352 = vst.msk [vmem:[%s689_s1 + $0xe] ss:$16 sm:$0x3] %vm278_vm4, %v268_v59  }
  0x8c   :  { %353 = vst.msk [vmem:[%s689_s1 + $0xe] ss:$16 sm:$0xc] %vm278_vm4, %v268_v59  }
  0x8d   :  { %354 = vst.msk [vmem:[%s689_s1 + $0xe] ss:$16 sm:$0x30] %vm278_vm4, %v268_v59  }
  0x8e   :  { %355 = vst.msk [vmem:[%s689_s1 + $0xe] ss:$16 sm:$0xc0] %vm278_vm4, %v268_v59   ;;  %v132_v62 = vpop.permute.xlu1 %131  }
  0x8f   :  { %296 = vst.msk [vmem:[%s689_s1 + $0x1] ss:$16 sm:$0x3] %vm19_vm2, %v52_v60  }
  0x90   :  { %297 = vst.msk [vmem:[%s689_s1 + $0x1] ss:$16 sm:$0xc] %vm19_vm2, %v52_v60   ;;  %v116_v63 = vpop.permute.xlu0 %115  }
  0x91   :  { %298 = vst.msk [vmem:[%s689_s1 + $0x1] ss:$16 sm:$0x30] %vm19_vm2, %v52_v60  }
  0x92   :  { %299 = vst.msk [vmem:[%s689_s1 + $0x1] ss:$16 sm:$0xc0] %vm19_vm2, %v52_v60  }
  0x93   :  { %316 = vst.msk [vmem:[%s689_s1 + $0x6] ss:$16 sm:$0x3] %vm19_vm2, %v132_v62  }
  0x94   :  { %317 = vst.msk [vmem:[%s689_s1 + $0x6] ss:$16 sm:$0xc] %vm19_vm2, %v132_v62  }
  0x95   :  { %318 = vst.msk [vmem:[%s689_s1 + $0x6] ss:$16 sm:$0x30] %vm19_vm2, %v132_v62  }
  0x96   :  { %319 = vst.msk [vmem:[%s689_s1 + $0x6] ss:$16 sm:$0xc0] %vm19_vm2, %v132_v62   ;;  %v180_v0 = vpop.permute.xlu1 %179  }
  0x97   :  { %312 = vst.msk [vmem:[%s689_s1 + $0x5] ss:$16 sm:$0x3] %vm19_vm2, %v116_v63  }
  0x98   :  { %313 = vst.msk [vmem:[%s689_s1 + $0x5] ss:$16 sm:$0xc] %vm19_vm2, %v116_v63   ;;  %v164_v1 = vpop.permute.xlu0 %163  }
  0x99   :  { %314 = vst.msk [vmem:[%s689_s1 + $0x5] ss:$16 sm:$0x30] %vm19_vm2, %v116_v63  }
  0x9a   :  { %315 = vst.msk [vmem:[%s689_s1 + $0x5] ss:$16 sm:$0xc0] %vm19_vm2, %v116_v63  }
  0x9b   :  { %332 = vst.msk [vmem:[%s689_s1 + $0xa] ss:$16 sm:$0x3] %vm19_vm2, %v196_v58  }
  0x9c   :  { %333 = vst.msk [vmem:[%s689_s1 + $0xa] ss:$16 sm:$0xc] %vm19_vm2, %v196_v58  }
  0x9d   :  { %334 = vst.msk [vmem:[%s689_s1 + $0xa] ss:$16 sm:$0x30] %vm19_vm2, %v196_v58  }
  0x9e   :  { %335 = vst.msk [vmem:[%s689_s1 + $0xa] ss:$16 sm:$0xc0] %vm19_vm2, %v196_v58   ;;  %v228_v2 = vpop.permute.xlu1 %227  }
  0x9f   :  { %328 = vst.msk [vmem:[%s689_s1 + $0x9] ss:$16 sm:$0x3] %vm19_vm2, %v180_v0  }
  0xa0   :  { %329 = vst.msk [vmem:[%s689_s1 + $0x9] ss:$16 sm:$0xc] %vm19_vm2, %v180_v0   ;;  %v212_v3 = vpop.permute.xlu0 %211  }
  0xa1   :  { %330 = vst.msk [vmem:[%s689_s1 + $0x9] ss:$16 sm:$0x30] %vm19_vm2, %v180_v0  }
  0xa2   :  { %331 = vst.msk [vmem:[%s689_s1 + $0x9] ss:$16 sm:$0xc0] %vm19_vm2, %v180_v0  }
  0xa3   :  { %324 = vst.msk [vmem:[%s689_s1 + $0x8] ss:$16 sm:$0x3] %vm19_vm2, %v164_v1  }
  0xa4   :  { %325 = vst.msk [vmem:[%s689_s1 + $0x8] ss:$16 sm:$0xc] %vm19_vm2, %v164_v1  }
  0xa5   :  { %326 = vst.msk [vmem:[%s689_s1 + $0x8] ss:$16 sm:$0x30] %vm19_vm2, %v164_v1  }
  0xa6   :  { %327 = vst.msk [vmem:[%s689_s1 + $0x8] ss:$16 sm:$0xc0] %vm19_vm2, %v164_v1  }
  0xa7   :  { %344 = vst.msk [vmem:[%s689_s1 + $0xd] ss:$16 sm:$0x3] %vm19_vm2, %v244_v61  }
  0xa8   :  { %345 = vst.msk [vmem:[%s689_s1 + $0xd] ss:$16 sm:$0xc] %vm19_vm2, %v244_v61  }
  0xa9   :  { %346 = vst.msk [vmem:[%s689_s1 + $0xd] ss:$16 sm:$0x30] %vm19_vm2, %v244_v61  }
  0xaa   :  { %347 = vst.msk [vmem:[%s689_s1 + $0xd] ss:$16 sm:$0xc0] %vm19_vm2, %v244_v61  }
  0xab   :  { %340 = vst.msk [vmem:[%s689_s1 + $0xc] ss:$16 sm:$0x3] %vm19_vm2, %v228_v2  }
  0xac   :  { %341 = vst.msk [vmem:[%s689_s1 + $0xc] ss:$16 sm:$0xc] %vm19_vm2, %v228_v2  }
  0xad   :  { %342 = vst.msk [vmem:[%s689_s1 + $0xc] ss:$16 sm:$0x30] %vm19_vm2, %v228_v2  }
  0xae   :  { %343 = vst.msk [vmem:[%s689_s1 + $0xc] ss:$16 sm:$0xc0] %vm19_vm2, %v228_v2  }
  0xaf   :  { %336 = vst.msk [vmem:[%s689_s1 + $0xb] ss:$16 sm:$0x3] %vm19_vm2, %v212_v3  }
  0xb0   :  { %337 = vst.msk [vmem:[%s689_s1 + $0xb] ss:$16 sm:$0xc] %vm19_vm2, %v212_v3  }
  0xb1   :  { %338 = vst.msk [vmem:[%s689_s1 + $0xb] ss:$16 sm:$0x30] %vm19_vm2, %v212_v3  }
  0xb2   :  { %339 = vst.msk [vmem:[%s689_s1 + $0xb] ss:$16 sm:$0xc0] %vm19_vm2, %v212_v3  }

// kernel: reverse.0
= control target key start
LH: loop header
LB: loop body
LE: loop exit
PB: predicated region body
PF: predicated region fallthrough
CT: control target
= control target key end

     0   :  { %v72_v3 = vlaneseq  ;;  %v65_v6 = vld [vmem:[#allocation0 + $0x7] ss:$-1 sm:$0xff]  ;;  %v79_v8 = vld [vmem:[#allocation0 + $0x17] ss:$-1 sm:$0xff]  ;;  %s331_s0 = inlined_call_operand.vmem [shape: f32[2,4,16,7], index: 0, kind: input, shape index: {}]   ;;  %s332_s1 = inlined_call_operand.vmem [shape: f32[2,4,16,7], index: 1, kind: output, shape index: {}]  }
   0x1   :  { %v45_v0 = vld [vmem:[%s331_s0] sm:$0xff]  ;;  %v47_v1 = vld [vmem:[%s331_s0 + $0x8] sm:$0xff]  ;;  %v49_v2 = vld [vmem:[%s331_s0 + $0x10] sm:$0xff]  ;;  %v66_v12 = vrot.slane %v65_v6, 1  ;;  %v80_v13 = vrot.slane %v79_v8, 1 }
   0x2   :  { %46 = vst [vmem:[#allocation0 + $0x8] sm:$0xff] %v45_v0  ;;  %v51_v4 = vld [vmem:[%s331_s0 + $0x18] sm:$0xff]  ;;  %v53_v5 = vld [vmem:[%s331_s0 + $0x20] sm:$0xff]  ;;  %v55_v7 = vld [vmem:[%s331_s0 + $0x28] sm:$0xff]  ;;  %v73_v10 = vshrl.u32 %v72_v3, 7 }
   0x3   :  { %48 = vst [vmem:[#allocation0 + $0x18] sm:$0xff] %v47_v1  ;;  %v57_v9 = vld [vmem:[%s331_s0 + $0x30] sm:$0xff]  ;;  %v59_v11 = vld [vmem:[%s331_s0 + $0x38] sm:$0xff]  ;;  %v93_v14 = vld [vmem:[#allocation0 + $0x27] ss:$-1 sm:$0xff] }
   0x4   :  { %50 = vst [vmem:[#allocation0 + $0x28] sm:$0xff] %v49_v2  ;;  %vm74_vm0 = vcmp.lt.s32.totalorder %v73_v10, 7  ;;  %v107_v16 = vld [vmem:[#allocation0 + $0x37] ss:$-1 sm:$0xff]  ;;  %v94_v19 = vrot.slane %v93_v14, 1 }
   0x5   :  { %52 = vst [vmem:[#allocation0 + $0x38] sm:$0xff] %v51_v4  ;;  %v121_v22 = vld [vmem:[#allocation0 + $0x47] ss:$-1 sm:$0xff]  ;;  %v108_v24 = vrot.slane %v107_v16, 1  ;;  %v135_v28 = vld [vmem:[#allocation0 + $0x57] ss:$-1 sm:$0xff] }
   0x6   :  { %54 = vst [vmem:[#allocation0 + $0x48] sm:$0xff] %v53_v5  ;;  %v122_v29 = vrot.slane %v121_v22, 1  ;;  %v149_v32 = vld [vmem:[#allocation0 + $0x67] ss:$-1 sm:$0xff]  ;;  %v136_v33 = vrot.slane %v135_v28, 1 }
   0x7   :  { %56 = vst [vmem:[#allocation0 + $0x58] sm:$0xff] %v55_v7  ;;  %v163_v36 = vld [vmem:[#allocation0 + $0x77] ss:$-1 sm:$0xff]  ;;  %v150_v37 = vrot.slane %v149_v32, 1 }
   0x8   :  { %58 = vst [vmem:[#allocation0 + $0x68] sm:$0xff] %v57_v9  ;;  %v164_v40 = vrot.slane %v163_v36, 1 }
   0x9   :  { %60 = vst [vmem:[#allocation0 + $0x78] sm:$0xff] %v59_v11  ;;  %v70_v15 = vld [vmem:[#allocation0 + $0xf] ss:$-1 sm:$0xff] }
   0xa   :  { %67 = vst [vmem:[#allocation1] sm:$0xff] %v66_v12  ;;  %v71_v17 = vrot.slane %v70_v15, 1  ;;  %v84_v18 = vld [vmem:[#allocation0 + $0x1f] ss:$-1 sm:$0xff] }
   0xb   :  { %81 = vst [vmem:[#allocation1 + $0x8] sm:$0xff] %v80_v13  ;;  %v85_v20 = vrot.slane %v84_v18, 1  ;;  %v98_v21 = vld [vmem:[#allocation0 + $0x2f] ss:$-1 sm:$0xff] }
   0xc   :  { %75 = vst.msk [vmem:[#allocation1] sm:$0xff] %vm74_vm0, %v71_v17  ;;  %v99_v23 = vrot.slane %v98_v21, 1  ;;  %v112_v25 = vld [vmem:[#allocation0 + $0x3f] ss:$-1 sm:$0xff] }
   0xd   :  { %89 = vst.msk [vmem:[#allocation1 + $0x8] sm:$0xff] %vm74_vm0, %v85_v20  ;;  %v113_v26 = vrot.slane %v112_v25, 1  ;;  %v126_v27 = vld [vmem:[#allocation0 + $0x4f] ss:$-1 sm:$0xff] }
   0xe   :  { %95 = vst [vmem:[#allocation1 + $0x10] sm:$0xff] %v94_v19  ;;  %v140_v30 = vld [vmem:[#allocation0 + $0x5f] ss:$-1 sm:$0xff]  ;;  %v127_v31 = vrot.slane %v126_v27, 1 }
   0xf   :  { %103 = vst.msk [vmem:[#allocation1 + $0x10] sm:$0xff] %vm74_vm0, %v99_v23  ;;  %v154_v34 = vld [vmem:[#allocation0 + $0x6f] ss:$-1 sm:$0xff]  ;;  %v141_v35 = vrot.slane %v140_v30, 1 }
  0x10   :  { %109 = vst [vmem:[#allocation1 + $0x18] sm:$0xff] %v108_v24  ;;  %v168_v38 = vld [vmem:[#allocation0 + $0x7f] ss:$-1 sm:$0xff]  ;;  %v155_v39 = vrot.slane %v154_v34, 1 }
  0x11   :  { %117 = vst.msk [vmem:[#allocation1 + $0x18] sm:$0xff] %vm74_vm0, %v113_v26  ;;  %v169_v41 = vrot.slane %v168_v38, 1 }
  0x12   :  { %123 = vst [vmem:[#allocation1 + $0x20] sm:$0xff] %v122_v29 }
  0x13   :  { %131 = vst.msk [vmem:[#allocation1 + $0x20] sm:$0xff] %vm74_vm0, %v127_v31  ;;  %v216_v42 = vld [vmem:[#allocation1] sm:$0xff] }
  0x14   :  { %137 = vst [vmem:[#allocation1 + $0x28] sm:$0xff] %v136_v33  ;;  %v218_v43 = vld [vmem:[#allocation1 + $0x8] sm:$0xff] }
  0x15   :  { %145 = vst.msk [vmem:[#allocation1 + $0x28] sm:$0xff] %vm74_vm0, %v141_v35 }
  0x16   :  { %151 = vst [vmem:[#allocation1 + $0x30] sm:$0xff] %v150_v37  ;;  %v220_v44 = vld [vmem:[#allocation1 + $0x10] sm:$0xff] }
  0x17   :  { %159 = vst.msk [vmem:[#allocation1 + $0x30] sm:$0xff] %vm74_vm0, %v155_v39 }
  0x18   :  { %165 = vst [vmem:[#allocation1 + $0x38] sm:$0xff] %v164_v40  ;;  %v222_v45 = vld [vmem:[#allocation1 + $0x18] sm:$0xff] }
  0x19   :  { %173 = vst.msk [vmem:[#allocation1 + $0x38] sm:$0xff] %vm74_vm0, %v169_v41 }
  0x1a   :  { %217 = vst [vmem:[%s332_s1] sm:$0xff] %v216_v42  ;;  %v224_v46 = vld [vmem:[#allocation1 + $0x20] sm:$0xff] }
  0x1b   :  { %219 = vst [vmem:[%s332_s1 + $0x8] sm:$0xff] %v218_v43 }
  0x1c   :  { %221 = vst [vmem:[%s332_s1 + $0x10] sm:$0xff] %v220_v44  ;;  %v226_v47 = vld [vmem:[#allocation1 + $0x28] sm:$0xff] }
  0x1d   :  { %223 = vst [vmem:[%s332_s1 + $0x18] sm:$0xff] %v222_v45 }
  0x1e   :  { %225 = vst [vmem:[%s332_s1 + $0x20] sm:$0xff] %v224_v46  ;;  %v228_v48 = vld [vmem:[#allocation1 + $0x30] sm:$0xff] }
  0x1f   :  { %227 = vst [vmem:[%s332_s1 + $0x28] sm:$0xff] %v226_v47 }
  0x20   :  { %229 = vst [vmem:[%s332_s1 + $0x30] sm:$0xff] %v228_v48  ;;  %v230_v49 = vld [vmem:[#allocation1 + $0x38] sm:$0xff] }
  0x21   :  { %231 = vst [vmem:[%s332_s1 + $0x38] sm:$0xff] %v230_v49 }

// kernel: _lambda_.1
= control target key start
LH: loop header
LB: loop body
LE: loop exit
PB: predicated region body
PF: predicated region fallthrough
CT: control target
= control target key end

     0   :  { %vm96_vm0 = vcmask 1043456   ;;  %s1010_s1 = inlined_call_operand.vmem [shape: f32[2,4,4,256], index: 1, kind: input, shape index: {}]   ;;  %s1011_s0 = inlined_call_operand.vmem [shape: f32[2,2,4,256], index: 0, kind: input, shape index: {}]   ;;  %s1012_s2 = inlined_call_operand.vmem [shape: f32[2,2,4,256], index: 2, kind: output, shape index: {}]  }
   0x1   :  { %v31_v0 = vld [vmem:[%s1010_s1] sm:$0xff]  ;;  %v552_v14 = vld [vmem:[%s1010_s1 + $0x8] sm:$0xff]  ;;  %v657_v34 = vld [vmem:[%s1011_s0 + $0x11] ss:$4 sm:$0x3] }
   0x2   :  { %45 = vst [vmem:[#allocation1] ss:$2 sm:$0xff] %v31_v0  ;;  %v547_v1 = vld [vmem:[%s1010_s1 + $0x20] sm:$0xff]  ;;  %v553_v19 = vld [vmem:[%s1010_s1 + $0x28] sm:$0xff]  ;;  %v558_v36 = vld [vmem:[%s1010_s1 + $0x10] sm:$0xff]  ;;  %v1020_v40 = vperm.slane %v657_v34, 0 }
   0x3   :  { %49 = vst [vmem:[#allocation1 + $0x10] ss:$2 sm:$0xff] %v31_v0  ;;  %v647_v30 = vld [vmem:[%s1011_s0 + $0x1] ss:$4 sm:$0x3]  ;;  %v190_v41 = vperm.slane %v657_v34, 1 }
   0x4   :  { %v652_v33 = vld [vmem:[%s1011_s0 + $0x9] ss:$4 sm:$0x3]  ;;  %v662_v35 = vld [vmem:[%s1011_s0 + $0x19] ss:$4 sm:$0x3] }
   0x5   :  { %v1016_v37 = vperm.slane %v647_v30, 0  ;;  %v1024_v38 = vperm.slane %v647_v30, 1  ;;  %v1014_v39 = vperm.slane %v652_v33, 0  ;;  %v1021_v42 = vperm.slane %v652_v33, 1  ;;  %v559_v61 = vld [vmem:[%s1010_s1 + $0x30] sm:$0xff] }
   0x6   :  { %v1013_v43 = vperm.slane %v662_v35, 0  ;;  %v1022_v46 = vperm.slane %v662_v35, 1 }
   0x9   :  { %v590_v2 = vld.sshfl [vmem:[#allocation1] sm:$0xff pattern:$0x75316420]  ;;  %v592_v3 = vld.sshfl [vmem:[#allocation1 + $0x8] sm:$0xff pattern:$0x75316420] }
   0xa   :  { %v594_v4 = vld.sshfl [vmem:[#allocation1 + $0x10] sm:$0xff pattern:$0x75316420]  ;;  %v596_v5 = vld.sshfl [vmem:[#allocation1 + $0x18] sm:$0xff pattern:$0x75316420] }
   0xb   :  { %71 = vst [vmem:[#allocation1] ss:$2 sm:$0xff] %v547_v1 }
   0xc   :  { %75 = vst [vmem:[#allocation1 + $0x10] ss:$2 sm:$0xff] %v547_v1 }
  0x12   :  { %v598_v6 = vld.sshfl [vmem:[#allocation1] sm:$0xff pattern:$0x75316420]  ;;  %v600_v7 = vld.sshfl [vmem:[#allocation1 + $0x8] sm:$0xff pattern:$0x75316420] }
  0x13   :  { %103 = vst [vmem:[#allocation1] ss:$2 sm:$0xff] %v547_v1  ;;  %v602_v8 = vld.sshfl [vmem:[#allocation1 + $0x10] sm:$0xff pattern:$0x75316420] }
  0x14   :  { %v604_v9 = vld.sshfl [vmem:[#allocation1 + $0x18] sm:$0xff pattern:$0x75316420] }
  0x15   :  { %107 = vst [vmem:[#allocation1 + $0x10] ss:$2 sm:$0xff] %v547_v1 }
  0x1a   :  { %v606_v10 = vld.sshfl [vmem:[#allocation1] sm:$0xff pattern:$0x75316420]  ;;  %v608_v11 = vld.sshfl [vmem:[#allocation1 + $0x8] sm:$0xff pattern:$0x75316420] }
  0x1b   :  { %118 = vst [vmem:[#allocation1] ss:$2 sm:$0xff] %v31_v0 }
  0x1c   :  { %v610_v12 = vld.sshfl [vmem:[#allocation1 + $0x10] sm:$0xff pattern:$0x75316420]  ;;  %v612_v13 = vld.sshfl [vmem:[#allocation1 + $0x18] sm:$0xff pattern:$0x75316420] }
  0x1d   :  { %122 = vst [vmem:[#allocation1 + $0x10] ss:$2 sm:$0xff] %v31_v0 }
  0x22   :  { %v617_v15 = vld.sshfl [vmem:[#allocation1] sm:$0xff pattern:$0x75316420]  ;;  %v619_v16 = vld.sshfl [vmem:[#allocation1 + $0x8] sm:$0xff pattern:$0x75316420] }
  0x23   :  { %172 = vst [vmem:[#allocation1] ss:$2 sm:$0xff] %v552_v14 }
  0x24   :  { %v621_v17 = vld.sshfl [vmem:[#allocation1 + $0x10] sm:$0xff pattern:$0x75316420]  ;;  %v623_v18 = vld.sshfl [vmem:[#allocation1 + $0x18] sm:$0xff pattern:$0x75316420] }
  0x25   :  { %176 = vst [vmem:[#allocation1 + $0x10] ss:$2 sm:$0xff] %v552_v14 }
  0x2a   :  { %v628_v20 = vld.sshfl [vmem:[#allocation1] sm:$0xff pattern:$0x75316420]  ;;  %v630_v21 = vld.sshfl [vmem:[#allocation1 + $0x8] sm:$0xff pattern:$0x75316420] }
  0x2b   :  { %198 = vst [vmem:[#allocation1] ss:$2 sm:$0xff] %v553_v19 }
  0x2c   :  { %v632_v22 = vld.sshfl [vmem:[#allocation1 + $0x10] sm:$0xff pattern:$0x75316420]  ;;  %v634_v23 = vld.sshfl [vmem:[#allocation1 + $0x18] sm:$0xff pattern:$0x75316420] }
  0x2d   :  { %202 = vst [vmem:[#allocation1 + $0x10] ss:$2 sm:$0xff] %v553_v19 }
  0x32   :  { %v636_v24 = vld.sshfl [vmem:[#allocation1] sm:$0xff pattern:$0x75316420]  ;;  %v638_v25 = vld.sshfl [vmem:[#allocation1 + $0x8] sm:$0xff pattern:$0x75316420] }
  0x33   :  { %229 = vst [vmem:[#allocation1] ss:$2 sm:$0xff] %v553_v19 }
  0x34   :  { %v640_v26 = vld.sshfl [vmem:[#allocation1 + $0x10] sm:$0xff pattern:$0x75316420]  ;;  %v642_v27 = vld.sshfl [vmem:[#allocation1 + $0x18] sm:$0xff pattern:$0x75316420] }
  0x35   :  { %233 = vst [vmem:[#allocation1 + $0x10] ss:$2 sm:$0xff] %v553_v19 }
  0x3a   :  { %v230_v28 = vld.sshfl [vmem:[#allocation1] sm:$0xff pattern:$0x75316420]  ;;  %v231_v29 = vld.sshfl [vmem:[#allocation1 + $0x8] sm:$0xff pattern:$0x75316420] }
  0x3b   :  { %244 = vst [vmem:[#allocation1] ss:$2 sm:$0xff] %v552_v14  ;;  %v241_v47 = vmul.f32 %v231_v29, %v1024_v38  ;;  %v240_v52 = vmul.f32 %v230_v28, %v1016_v37 }
  0x3c   :  { %v234_v31 = vld.sshfl [vmem:[#allocation1 + $0x10] sm:$0xff pattern:$0x75316420]  ;;  %v235_v32 = vld.sshfl [vmem:[#allocation1 + $0x18] sm:$0xff pattern:$0x75316420] }
  0x3d   :  { %248 = vst [vmem:[#allocation1 + $0x10] ss:$2 sm:$0xff] %v552_v14  ;;  %v243_v54 = vmul.f32 %v235_v32, %v1021_v42  ;;  %v242_v59 = vmul.f32 %v234_v31, %v1014_v39  ;;  %v711_v31 = vld [vmem:[%s1011_s0 + $0x10] ss:$4 sm:$0x3] }
  0x42   :  { %v245_v44 = vld.sshfl [vmem:[#allocation1] sm:$0xff pattern:$0x75316420]  ;;  %v246_v45 = vld.sshfl [vmem:[#allocation1 + $0x8] sm:$0xff pattern:$0x75316420] }
  0x43   :  { %298 = vst [vmem:[#allocation1] ss:$2 sm:$0xff] %v558_v36  ;;  %v255_v48 = vmul.f32 %v245_v44, %v1020_v40  ;;  %v256_v49 = vmul.f32 %v246_v45, %v190_v41  ;;  %v718_v45 = vld [vmem:[%s1011_s0] ss:$4 sm:$0x3] }
  0x44   :  { %v249_v50 = vld.sshfl [vmem:[#allocation1 + $0x10] sm:$0xff pattern:$0x75316420]  ;;  %v250_v51 = vld.sshfl [vmem:[#allocation1 + $0x18] sm:$0xff pattern:$0x75316420] }
  0x45   :  { %302 = vst [vmem:[#allocation1 + $0x10] ss:$2 sm:$0xff] %v558_v36  ;;  %v260_v53 = vadd.f32 %v256_v49, %v241_v47  ;;  %v257_v55 = vmul.f32 %v249_v50, %v1013_v43  ;;  %v258_v56 = vmul.f32 %v250_v51, %v1022_v46  ;;  %v259_v57 = vadd.f32 %v255_v48, %v240_v52  ;;  %v730_v52 = vld [vmem:[%s1011_s0 + $0x18] ss:$4 sm:$0x3] }
  0x46   :  { %v1015_v47 = vperm.slane %v711_v31, 1  ;;  %v1017_v50 = vperm.slane %v718_v45, 1  ;;  %v760_v43 = vld [vmem:[%s1011_s0 + $0x12] ss:$4 sm:$0x3]  ;;  %v210_v46 = vmul.f32 %v638_v25, %v190_v41  ;;  %v821_v41 = vld [vmem:[%s1010_s1 + $0x38] sm:$0xff] }
  0x47   :  { %v267_v58 = vrot.slane %v260_v53, 4  ;;  %v262_v60 = vadd.f32 %v258_v56, %v243_v54  ;;  %v261_v63 = vadd.f32 %v257_v55, %v242_v59  ;;  %v742_v56 = vld [vmem:[%s1011_s0 + $0x8] ss:$4 sm:$0x3] }
  0x48   :  { %v83_v51 = vmul.f32 %v600_v7, %v1015_v47  ;;  %v57_v55 = vmul.f32 %v592_v3, %v1017_v50  ;;  %v1019_v7 = vperm.slane %v730_v52, 1  ;;  %v754_v3 = vld [vmem:[%s1010_s1 + $0x18] sm:$0xff] }
  0x49   :  { %v695_v62 = vsel %vm96_vm0, %v259_v57, %v267_v58  ;;  %v268_v0 = vrot.slane %v262_v60, 4  ;;  %v1018_v60 = vperm.slane %v711_v31, 0  ;;  %v778_v47 = vld [vmem:[%s1011_s0 + $0x1a] ss:$4 sm:$0x3] }
  0x4a   :  { %1028 = vst [vmem:[#allocation2_spill] sm:$0xff] %v695_v62  ;;  %v697_v1 = vld.sshfl [vmem:[#allocation1] sm:$0xff pattern:$0x75316420]  ;;  %v87_v59 = vsub.f32 %v57_v55, %v83_v51  ;;  %v85_v55 = vmul.f32 %v604_v9, %v1019_v7 }
  0x4b   :  { %v699_v14 = vld.sshfl [vmem:[#allocation1 + $0x8] sm:$0xff pattern:$0x75316420]  ;;  %v702_v19 = vsel %vm96_vm0, %v261_v63, %v268_v0  ;;  %v1023_v63 = vperm.slane %v718_v45, 0  ;;  %v82_v39 = vmul.f32 %v598_v6, %v1018_v60 }
  0x4c   :  { %324 = vst [vmem:[#allocation1] ss:$2 sm:$0xff] %v559_v61  ;;  %v704_v28 = vld.sshfl [vmem:[#allocation1 + $0x10] sm:$0xff pattern:$0x75316420]  ;;  %v94_v0 = vrot.slane %v87_v59, 4 }
  0x4d   :  { %1029 = vst [vmem:[#allocation3_spill] sm:$0xff] %v702_v19  ;;  %v706_v29 = vld.sshfl [vmem:[#allocation1 + $0x18] sm:$0xff pattern:$0x75316420]  ;;  %v56_v6 = vmul.f32 %v590_v2, %v1023_v63  ;;  %v1026_v2 = vperm.slane %v778_v47, 1 }
  0x4e   :  { %328 = vst [vmem:[#allocation1 + $0x10] ss:$2 sm:$0xff] %v559_v61  ;;  %v773_v59 = vld [vmem:[%s1011_s0 + $0x2] ss:$4 sm:$0x3] }
  0x4f   :  { %v793_v7 = vld [vmem:[%s1011_s0 + $0xa] ss:$4 sm:$0x3] }
  0x53   :  { %v713_v32 = vld.sshfl [vmem:[#allocation1] sm:$0xff pattern:$0x75316420]  ;;  %v326_v44 = vld.sshfl [vmem:[#allocation1 + $0x8] sm:$0xff pattern:$0x75316420] }
  0x54   :  { %355 = vst [vmem:[#allocation1] ss:$2 sm:$0xff] %v559_v61 }
  0x55   :  { %v721_v48 = vld.sshfl [vmem:[#allocation1 + $0x10] sm:$0xff pattern:$0x75316420]  ;;  %v330_v49 = vld.sshfl [vmem:[#allocation1 + $0x18] sm:$0xff pattern:$0x75316420] }
  0x56   :  { %359 = vst [vmem:[#allocation1 + $0x10] ss:$2 sm:$0xff] %v559_v61  ;;  %v39_v61 = vperm.slane %v742_v56, 1  ;;  %v338_v19 = vmul.f32 %v330_v49, %v1026_v2 }
  0x58   :  { %v59_v9 = vmul.f32 %v596_v5, %v39_v61  ;;  %v86_v5 = vsub.f32 %v56_v6, %v82_v39  ;;  %v1032_v39 = vperm.slane %v662_v35, 1 }
  0x5a   :  { %v89_v51 = vsub.f32 %v59_v9, %v85_v55  ;;  %v809_v38 = vsel %vm96_vm0, %v86_v5, %v94_v0  ;;  %v1031_v55 = vperm.slane %v647_v30, 1  ;;  %v212_v6 = vmul.f32 %v642_v27, %v1032_v39 }
  0x5b   :  { %v732_v53 = vld.sshfl [vmem:[#allocation1] sm:$0xff pattern:$0x75316420]  ;;  %v734_v54 = vld.sshfl [vmem:[#allocation1 + $0x8] sm:$0xff pattern:$0x75316420] }
  0x5c   :  { %370 = vst [vmem:[#allocation1] ss:$2 sm:$0xff] %v558_v36  ;;  %v184_v9 = vmul.f32 %v630_v21, %v1031_v55  ;;  %v1033_v0 = vperm.slane %v760_v43, 1  ;;  %v95_v55 = vrot.slane %v89_v51, 4  ;;  %v1027_v27 = vperm.slane %v760_v43, 0 }
  0x5d   :  { %v745_v57 = vld.sshfl [vmem:[#allocation1 + $0x10] sm:$0xff pattern:$0x75316420]  ;;  %v747_v58 = vld.sshfl [vmem:[#allocation1 + $0x18] sm:$0xff pattern:$0x75316420] }
  0x5e   :  { %1030 = vst [vmem:[#allocation4_spill] sm:$0xff] %v745_v57  ;;  %v336_v5 = vmul.f32 %v326_v44, %v1033_v0  ;;  %v214_v63 = vsub.f32 %v184_v9, %v210_v46  ;;  %v1035_v39 = vperm.slane %v652_v33, 1  ;;  %v1036_v57 = vperm.slane %v657_v34, 0  ;;  %v844_v46 = vld [vmem:[%s1011_s0 + $0x3] ss:$4 sm:$0x3] }
  0x5f   :  { %374 = vst [vmem:[#allocation1 + $0x10] ss:$2 sm:$0xff] %v558_v36  ;;  %v1025_v36 = vperm.slane %v730_v52, 0  ;;  %v1037_v0 = vperm.slane %v773_v59, 1 }
  0x60   :  { %v186_v25 = vmul.f32 %v634_v23, %v1035_v39  ;;  %v209_v44 = vmul.f32 %v636_v24, %v1036_v57  ;;  %v850_v23 = vld [vmem:[%s1011_s0 + $0x13] ss:$4 sm:$0x3]  ;;  %v1038_v24 = vperm.slane %v793_v7, 1  ;;  %v1039_v57 = vperm.slane %v718_v45, 1 }
  0x61   :  { %v84_v60 = vmul.f32 %v602_v8, %v1025_v36  ;;  %v1034_v36 = vperm.slane %v742_v56, 0 }
  0x62   :  { %v216_v34 = vsub.f32 %v186_v25, %v212_v6  ;;  %v312_v49 = vmul.f32 %v706_v29, %v1038_v24  ;;  %v864_v6 = vmul.f32 %v612_v13, %v39_v61  ;;  %v221_v29 = vrot.slane %v214_v63, 4 }
  0x63   :  { %v780_v37 = vld.sshfl [vmem:[#allocation1] sm:$0xff pattern:$0x75316420]  ;;  %v782_v50 = vld.sshfl [vmem:[#allocation1 + $0x8] sm:$0xff pattern:$0x75316420]  ;;  %v58_v21 = vmul.f32 %v594_v4, %v1034_v36  ;;  %v310_v4 = vmul.f32 %v699_v14, %v1037_v0  ;;  %v115_v36 = vmul.f32 %v608_v11, %v1039_v57 }
  0x64   :  { %424 = vst [vmem:[#allocation1] ss:$2 sm:$0xff] %v754_v3  ;;  %v291_v25 = vperm.slane %v793_v7, 0  ;;  %v342_v24 = vsub.f32 %v312_v49, %v338_v19  ;;  %v1041_v11 = vperm.slane %v711_v31, 1  ;;  %v1043_v61 = vperm.slane %v662_v35, 0 }
  0x65   :  { %v88_v51 = vsub.f32 %v58_v21, %v84_v60  ;;  %v1040_v21 = vperm.slane %v647_v30, 0  ;;  %v340_v0 = vsub.f32 %v310_v4, %v336_v5  ;;  %v1042_v30 = vperm.slane %v652_v33, 0  ;;  %v883_v19 = vld [vmem:[%s1011_s0 + $0xb] ss:$4 sm:$0x3] }
  0x66   :  { %v795_v40 = vld.sshfl [vmem:[#allocation1 + $0x10] sm:$0xff pattern:$0x75316420]  ;;  %v797_v42 = vld.sshfl [vmem:[#allocation1 + $0x18] sm:$0xff pattern:$0x75316420]  ;;  %v130_v57 = vmul.f32 %v619_v16, %v1041_v11  ;;  %v211_v63 = vmul.f32 %v640_v26, %v1043_v61 }
  0x67   :  { %428 = vst [vmem:[#allocation1 + $0x10] ss:$2 sm:$0xff] %v754_v3  ;;  %v183_v39 = vmul.f32 %v628_v20, %v1040_v21  ;;  %v98_v2 = vsel %vm96_vm0, %v88_v51, %v95_v55  ;;  %v335_v20 = vmul.f32 %v713_v32, %v1027_v27  ;;  %v185_v13 = vmul.f32 %v632_v22, %v1042_v30  ;;  %v888_v16 = vld [vmem:[%s1011_s0 + $0x1b] ss:$4 sm:$0x3] }
  0x68   :  { %v416_v32 = vperm.slane %v844_v46, 1  ;;  %v441_v33 = vperm.slane %v850_v23, 0  ;;  %v442_v22 = vperm.slane %v850_v23, 1  ;;  %v222_v5 = vrot.slane %v216_v34, 4 }
  0x69   :  { %v213_v14 = vsub.f32 %v183_v39, %v209_v44  ;;  %v1044_v35 = vperm.slane %v773_v59, 0  ;;  %v347_v55 = vrot.slane %v340_v0, 4  ;;  %v415_v44 = vperm.slane %v844_v46, 0 }
  0x6a   :  { %v1045_v4 = vperm.slane %v778_v47, 0  ;;  %v348_v49 = vrot.slane %v342_v24, 4  ;;  %v418_v21 = vperm.slane %v883_v19, 1  ;;  %v443_v39 = vperm.slane %v888_v16, 0 }
  0x6b   :  { %v425_v62 = vld.sshfl [vmem:[#allocation1] sm:$0xff pattern:$0x75316420]  ;;  %v426_v8 = vld.sshfl [vmem:[#allocation1 + $0x8] sm:$0xff pattern:$0x75316420]  ;;  %v309_v26 = vmul.f32 %v697_v1, %v1044_v35  ;;  %v223_v61 = vsel %vm96_vm0, %v213_v14, %v221_v29  ;;  %v215_v1 = vsub.f32 %v185_v13, %v211_v63  ;;  %v311_v0 = vmul.f32 %v704_v28, %v291_v25 }
  0x6c   :  { %450 = vst [vmem:[#allocation1] ss:$2 sm:$0xff] %v821_v41  ;;  %v337_v51 = vmul.f32 %v721_v48, %v1045_v4  ;;  %v444_v11 = vperm.slane %v888_v16, 1  ;;  %v436_v48 = vmul.f32 %v426_v8, %v416_v32  ;;  %v417_v4 = vperm.slane %v883_v19, 0 }
  0x6d   :  { %v339_v27 = vsub.f32 %v309_v26, %v335_v20  ;;  %v435_v28 = vmul.f32 %v425_v62, %v415_v44  ;;  %v224_v13 = vsel %vm96_vm0, %v215_v1, %v222_v5  ;;  %v1046_v62 = vperm.slane %v730_v52, 1 }
  0x6e   :  { %v429_v9 = vld.sshfl [vmem:[#allocation1 + $0x10] sm:$0xff pattern:$0x75316420]  ;;  %v430_v60 = vld.sshfl [vmem:[#allocation1 + $0x18] sm:$0xff pattern:$0x75316420]  ;;  %v341_v63 = vsub.f32 %v311_v0, %v337_v51 }
  0x6f   :  { %454 = vst [vmem:[#allocation1 + $0x10] ss:$2 sm:$0xff] %v821_v41  ;;  %v349_v20 = vsel %vm96_vm0, %v339_v27, %v347_v55  ;;  %v438_v26 = vmul.f32 %v430_v60, %v418_v21  ;;  %v227_v27 = vadd.f32 %v223_v61, %v809_v38  ;;  %v132_v5 = vmul.f32 %v623_v18, %v1046_v62 }
  0x70   :  { %v350_v55 = vsel %vm96_vm0, %v341_v63, %v348_v49  ;;  %v437_v1 = vmul.f32 %v429_v9, %v417_v4  ;;  %v1048_v63 = vperm.slane %v778_v47, 1 }
  0x71   :  { %v353_v0 = vadd.f32 %v349_v20, %v227_v27  ;;  %v1049_v20 = vperm.slane %v773_v59, 1 }
  0x72   :  { %v384_v18 = vmul.f32 %v797_v42, %v1048_v63  ;;  %v1051_v42 = vperm.slane %v793_v7, 1 }
  0x73   :  { %v451_v30 = vld.sshfl [vmem:[#allocation1] sm:$0xff pattern:$0x75316420]  ;;  %v452_v34 = vld.sshfl [vmem:[#allocation1 + $0x8] sm:$0xff pattern:$0x75316420] }
  0x74   :  { %481 = vst [vmem:[#allocation1] ss:$2 sm:$0xff] %v821_v41  ;;  %v461_v24 = vmul.f32 %v451_v30, %v441_v33  ;;  %v462_v35 = vmul.f32 %v452_v34, %v442_v22 }
  0x76   :  { %v455_v14 = vld.sshfl [vmem:[#allocation1 + $0x10] sm:$0xff pattern:$0x75316420]  ;;  %v456_v29 = vld.sshfl [vmem:[#allocation1 + $0x18] sm:$0xff pattern:$0x75316420]  ;;  %v466_v8 = vsub.f32 %v436_v48, %v462_v35  ;;  %v465_v51 = vsub.f32 %v435_v28, %v461_v24  ;;  %v228_v48 = vadd.f32 %v224_v13, %v98_v2  ;;  %v134_v35 = vadd.f32 %v130_v57, %v115_v36 }
  0x77   :  { %485 = vst [vmem:[#allocation1 + $0x10] ss:$2 sm:$0xff] %v821_v41  ;;  %v463_v30 = vmul.f32 %v455_v14, %v443_v39  ;;  %v464_v34 = vmul.f32 %v456_v29, %v444_v11  ;;  %v1047_v14 = vperm.slane %v760_v43, 1  ;;  %v367_v2 = vmul.f32 %v734_v54, %v1049_v20  ;;  %v1060_v20 = vld [vmem:[#allocation3_spill] sm:$0xff] }
  0x78   :  { %v473_v41 = vrot.slane %v466_v8, 4  ;;  %v354_v9 = vadd.f32 %v350_v55, %v228_v48  ;;  %v1050_v36 = vperm.slane %v711_v31, 0  ;;  %v136_v13 = vadd.f32 %v132_v5, %v864_v6 }
  0x79   :  { %v468_v60 = vsub.f32 %v438_v26, %v464_v34  ;;  %v382_v29 = vmul.f32 %v782_v50, %v1047_v14  ;;  %v467_v49 = vsub.f32 %v437_v1, %v463_v30  ;;  %v369_v26 = vmul.f32 %v747_v58, %v1051_v42 }
  0x7a   :  { %v475_v38 = vsel %vm96_vm0, %v465_v51, %v473_v41  ;;  %v129_v57 = vmul.f32 %v617_v15, %v1050_v36  ;;  %v1052_v31 = vperm.slane %v718_v45, 0  ;;  %v141_v55 = vrot.slane %v134_v35, 4 }
  0x7b   :  { %v474_v61 = vrot.slane %v468_v60, 4  ;;  %v482_v24 = vld.sshfl [vmem:[#allocation1] sm:$0xff pattern:$0x75316420]  ;;  %v479_v8 = vadd.f32 %v475_v38, %v353_v0  ;;  %v386_v27 = vadd.f32 %v382_v29, %v367_v2  ;;  %v1053_v6 = vperm.slane %v730_v52, 0 }
  0x7c   :  { %v483_v28 = vld.sshfl [vmem:[#allocation1 + $0x8] sm:$0xff pattern:$0x75316420]  ;;  %v114_v15 = vmul.f32 %v606_v10, %v1052_v31  ;;  %v388_v58 = vadd.f32 %v384_v18, %v369_v26  ;;  %v1054_v5 = vperm.slane %v760_v43, 0  ;;  %v142_v10 = vrot.slane %v136_v13, 4 }
  0x7d   :  { %496 = vst [vmem:[#allocation1] ss:$2 sm:$0xff] %v754_v3  ;;  %v476_v50 = vsel %vm96_vm0, %v467_v49, %v474_v61  ;;  %v131_v62 = vmul.f32 %v621_v17, %v1053_v6  ;;  %v1056_v1 = vperm.slane %v773_v59, 0  ;;  %v393_v17 = vrot.slane %v386_v27, 4 }
  0x7e   :  { %v486_v30 = vld.sshfl [vmem:[#allocation1 + $0x10] sm:$0xff pattern:$0x75316420]  ;;  %v487_v34 = vld.sshfl [vmem:[#allocation1 + $0x18] sm:$0xff pattern:$0x75316420]  ;;  %527 = vst [vmem:[%s1012_s2] sm:$0xff] %v479_v8  ;;  %v480_v54 = vadd.f32 %v476_v50, %v354_v9  ;;  %v381_v51 = vmul.f32 %v780_v37, %v1054_v5  ;;  %v133_v41 = vadd.f32 %v129_v57, %v114_v15  ;;  %v493_v59 = vmul.f32 %v483_v28, %v416_v32 }
  0x7f   :  { %500 = vst [vmem:[#allocation1 + $0x10] ss:$2 sm:$0xff] %v754_v3  ;;  %v1055_v3 = vperm.slane %v742_v56, 0  ;;  %v366_v52 = vmul.f32 %v732_v53, %v1056_v1  ;;  %v1057_v60 = vperm.slane %v778_v47, 0  ;;  %v394_v35 = vrot.slane %v388_v58, 4 }
  0x80   :  { %528 = vst [vmem:[%s1012_s2 + $0x8] sm:$0xff] %v480_v54  ;;  %v143_v48 = vsel %vm96_vm0, %v133_v41, %v141_v55  ;;  %v492_v49 = vmul.f32 %v482_v24, %v415_v44  ;;  %v495_v32 = vmul.f32 %v487_v34, %v418_v21  ;;  %v494_v44 = vmul.f32 %v486_v30, %v417_v4 }
  0x81   :  { %v116_v45 = vmul.f32 %v610_v12, %v1055_v3  ;;  %v383_v0 = vmul.f32 %v795_v40, %v1057_v60  ;;  %v385_v37 = vadd.f32 %v381_v51, %v366_v52  ;;  %v1058_v12 = vld [vmem:[#allocation4_spill] sm:$0xff] }
  0x82   :  { %v368_v56 = vmul.f32 %v1058_v12, %v291_v25 }
  0x83   :  { %v135_v43 = vadd.f32 %v131_v62, %v116_v45  ;;  %v395_v38 = vsel %vm96_vm0, %v385_v37, %v393_v17 }
  0x84   :  { %v497_v14 = vld.sshfl [vmem:[#allocation1] sm:$0xff pattern:$0x75316420]  ;;  %v498_v29 = vld.sshfl [vmem:[#allocation1 + $0x8] sm:$0xff pattern:$0x75316420]  ;;  %v387_v61 = vadd.f32 %v383_v0, %v368_v56 }
  0x85   :  { %v507_v53 = vmul.f32 %v497_v14, %v441_v33  ;;  %v508_v40 = vmul.f32 %v498_v29, %v442_v22  ;;  %v144_v47 = vsel %vm96_vm0, %v135_v43, %v142_v10  ;;  %v1059_v22 = vld [vmem:[#allocation2_spill] sm:$0xff] }
  0x86   :  { %v501_v7 = vld.sshfl [vmem:[#allocation1 + $0x10] sm:$0xff pattern:$0x75316420]  ;;  %v502_v63 = vld.sshfl [vmem:[#allocation1 + $0x18] sm:$0xff pattern:$0x75316420]  ;;  %v273_v18 = vadd.f32 %v1059_v22, %v143_v48  ;;  %v396_v28 = vsel %vm96_vm0, %v387_v61, %v394_v35  ;;  %v274_v2 = vadd.f32 %v1060_v20, %v144_v47 }
  0x87   :  { %v512_v25 = vadd.f32 %v508_v40, %v493_v59  ;;  %v509_v33 = vmul.f32 %v501_v7, %v443_v39  ;;  %v510_v23 = vmul.f32 %v502_v63, %v444_v11  ;;  %v511_v8 = vadd.f32 %v507_v53, %v492_v49 }
  0x88   :  { %v399_v9 = vadd.f32 %v395_v38, %v273_v18  ;;  %v400_v16 = vadd.f32 %v396_v28, %v274_v2 }
  0x89   :  { %v519_v46 = vrot.slane %v512_v25, 4  ;;  %v514_v24 = vadd.f32 %v510_v23, %v495_v32  ;;  %v513_v50 = vadd.f32 %v509_v33, %v494_v44 }
  0x8b   :  { %v521_v21 = vsel %vm96_vm0, %v511_v8, %v519_v46  ;;  %v520_v39 = vrot.slane %v514_v24, 4 }
  0x8c   :  { %v525_v36 = vadd.f32 %v521_v21, %v399_v9 }
  0x8d   :  { %v522_v11 = vsel %vm96_vm0, %v513_v50, %v520_v39 }
  0x8e   :  { %566 = vst [vmem:[%s1012_s2 + $0x10] sm:$0xff] %v525_v36  ;;  %v526_v57 = vadd.f32 %v522_v11, %v400_v16 }
  0x90   :  { %567 = vst [vmem:[%s1012_s2 + $0x18] sm:$0xff] %v526_v57 }

</bundles_post_ra>
